<compile_context>
chip_gen: v6e
topology: v6e:2x2x1
jax: 0.10.0
libtpu: 0.0.40
codegen_flags: <defaults>
</compile_context>

<pallas_src>
import functools

import jax
import jax.numpy as jnp
from jax.experimental import pallas as pl
from jax.experimental.pallas import tpu as pltpu


def _self_output_kernel(x_ref, res_ref, w_ref, b_ref, g_ref, beta_ref, o_ref,
                        *, eps: float, inv_h: float):
    # Dense on the MXU: activations cast to bf16 at the point of use (no
    # separate wrapper cast pass); W is pre-transposed to (H_in, H_out) so this
    # is the plain contraction. Accumulate in f32.
    y = jnp.dot(x_ref[...].astype(jnp.bfloat16), w_ref[...],
                preferred_element_type=jnp.float32)

    # Bias + residual in f32.  Dropout is identity at inference time.
    # TODO(synk): training-mode dropout (pltpu.prng_random_bits mask) not emitted.
    z = y + b_ref[...] + res_ref[...].astype(jnp.float32)

    # LayerNorm over the hidden axis; centered two-pass variance (stable even
    # when |mean| >> std).  For a ragged final block the out-of-range rows may
    # hold garbage, but rows are independent and their stores are masked.
    mean = jnp.sum(z, axis=-1, keepdims=True) * inv_h
    zc = z - mean
    var = jnp.sum(zc * zc, axis=-1, keepdims=True) * inv_h
    normed = zc * jax.lax.rsqrt(var + eps)
    o_ref[...] = (normed * g_ref[...] + beta_ref[...]).astype(o_ref.dtype)


def _round_up(x, m):
    return (x + m - 1) // m * m


def quant_bert_self_output(hidden_states, input_tensor, weight, bias,
                           ln_gamma, ln_beta, *, eps=1e-12, tm=512,
                           out_dtype=None):
    """hidden_states, input_tensor: (B, S, H).  weight: (H, H) in PyTorch
    (out_features, in_features) layout.  Returns (B, S, H) in `out_dtype`
    (defaults to hidden_states.dtype; pass jnp.bfloat16 to halve output HBM
    traffic when the consumer accepts it)."""
    B, S, H = hidden_states.shape
    M = B * S
    out_dtype = hidden_states.dtype if out_dtype is None else out_dtype

    # Row tile: multiple of 16 (bf16 sublane packing), clamped for small M.
    # Keep >= 2 grid steps when M allows so a "parallel" grid axis can feed
    # both v7x TensorCores.  No HBM-side padding: grid is cdiv(M, tm) and the
    # ragged final block uses masked stores.
    tm_eff = min(tm, _round_up(M, 16))
    if M > 16 and pl.cdiv(M, tm_eff) < 2:
        tm_eff = _round_up(pl.cdiv(M, 2), 16)
    grid_m = pl.cdiv(M, tm_eff)

    x2 = hidden_states.reshape(M, H)          # native dtype; bf16 cast in-kernel
    r2 = input_tensor.reshape(M, H)

    # One-time parameter prep (constant-foldable for frozen weights):
    # transpose W to (H_in, H_out) so the kernel uses the standard contraction.
    # TODO(synk): despite the "Quant" name the reference forward has no int8/fp8
    # quantization; bf16 weights here are a perf choice, not a quant scheme.
    w_t = jnp.transpose(weight).astype(jnp.bfloat16)      # (H_in, H_out)
    b2 = bias.reshape(1, H).astype(jnp.float32)
    g2 = ln_gamma.reshape(1, H).astype(jnp.float32)
    be2 = ln_beta.reshape(1, H).astype(jnp.float32)

    kernel = functools.partial(_self_output_kernel, eps=eps, inv_h=1.0 / H)

    bytes_x = jnp.dtype(x2.dtype).itemsize
    bytes_res = jnp.dtype(r2.dtype).itemsize
    bytes_out = jnp.dtype(out_dtype).itemsize
    cost = pl.CostEstimate(
        flops=2 * M * H * H,
        bytes_accessed=M * H * (bytes_x + bytes_res + bytes_out) + 2 * H * H,
        transcendentals=0)

    out = pl.pallas_call(
        kernel,
        out_shape=jax.ShapeDtypeStruct((M, H), out_dtype),
        grid_spec=pltpu.PrefetchScalarGridSpec(
            num_scalar_prefetch=0,
            grid=(grid_m,),
            in_specs=[
                pl.BlockSpec((tm_eff, H), lambda i: (i, 0)),       # x rows
                pl.BlockSpec((tm_eff, H), lambda i: (i, 0)),       # residual rows
                pl.BlockSpec((H, H), lambda i: (0, 0),
                             pipeline_mode=pl.Buffered(1)),        # W resident
                pl.BlockSpec((1, H), lambda i: (0, 0),
                             pipeline_mode=pl.Buffered(1)),        # bias
                pl.BlockSpec((1, H), lambda i: (0, 0),
                             pipeline_mode=pl.Buffered(1)),        # LN gamma
                pl.BlockSpec((1, H), lambda i: (0, 0),
                             pipeline_mode=pl.Buffered(1)),        # LN beta
            ],
            out_specs=pl.BlockSpec((tm_eff, H), lambda i: (i, 0)),
        ),
        compiler_params=pltpu.CompilerParams(
            dimension_semantics=("parallel",),
            vmem_limit_bytes=32 * 1024 * 1024),
        cost_estimate=cost,
    )(x2, r2, w_t, b2, g2, be2)

    return out.reshape(B, S, H)


def _reference(hidden_states, input_tensor, weight, bias, gamma, beta, eps):
    """Pure-JAX reference with the same bf16-matmul / f32-accumulate contract."""
    B, S, H = hidden_states.shape
    x = hidden_states.reshape(B * S, H).astype(jnp.bfloat16)
    w = jnp.transpose(weight).astype(jnp.bfloat16)
    y = jnp.dot(x, w, preferred_element_type=jnp.float32)
    z = y.reshape(B, S, H) + bias + input_tensor
    mean = jnp.mean(z, axis=-1, keepdims=True)
    var = jnp.mean((z - mean) ** 2, axis=-1, keepdims=True)
    return (z - mean) * jax.lax.rsqrt(var + eps) * gamma + beta


if __name__ == "__main__":
    H = 256                       # lane-dense hidden size (multiple of 128)
    eps = 1e-12

    key = jax.random.PRNGKey(0)
    k_hs, k_in, k_w, k_b, k_g, k_be = jax.random.split(key, 6)

    # Deterministic parameters (Linear weight in PyTorch (out, in) layout).
    weight = jax.random.normal(k_w, (H, H), dtype=jnp.float32) * 0.02
    bias = jax.random.normal(k_b, (H,), dtype=jnp.float32) * 0.01
    ln_gamma = 1.0 + 0.1 * jax.random.normal(k_g, (H,), dtype=jnp.float32)
    ln_beta = 0.1 * jax.random.normal(k_be, (H,), dtype=jnp.float32)

    # Check an exact-tile shape and a ragged shape (exercises the no-pad,
    # masked-final-block path).
    for (B, S) in ((2, 8), (2, 9)):
        k1, k2 = jax.random.split(jax.random.fold_in(k_hs, S), 2)
        hidden_states = jax.random.normal(k1, (B, S, H), dtype=jnp.float32)
        input_tensor = jax.random.normal(k2, (B, S, H), dtype=jnp.float32)

        out = quant_bert_self_output(hidden_states, input_tensor, weight, bias,
                                     ln_gamma, ln_beta, eps=eps)
        out = jax.block_until_ready(out)

        ref = _reference(hidden_states, input_tensor, weight, bias,
                         ln_gamma, ln_beta, eps)
        assert out.shape == (B, S, H)
        assert jnp.allclose(out, ref, atol=1e-2, rtol=1e-2), \
            f"mismatch vs reference for shape {(B, S, H)}"

    print("KERNEL_OK")
</pallas_src>

<mosaic_0001>
module attributes {stable_mosaic.version = 11 : i64} {
  func.func @_self_output_kernel(%arg0: i32, %arg1: memref<16x256xf32, #tpu.memory_space<vmem>>, %arg2: memref<16x256xf32, #tpu.memory_space<vmem>>, %arg3: memref<256x256xbf16, #tpu.memory_space<vmem>>, %arg4: memref<1x256xf32, #tpu.memory_space<vmem>>, %arg5: memref<1x256xf32, #tpu.memory_space<vmem>>, %arg6: memref<1x256xf32, #tpu.memory_space<vmem>>, %arg7: memref<16x256xf32, #tpu.memory_space<vmem>>) attributes {dimension_semantics = [#tpu.dimension_semantics<parallel>], iteration_bounds = array<i64: 1>, scalar_prefetch = 0 : i64, scratch_operands = 0 : i64, tpu.core_type = #tpu.core_type<tc>, window_params = [{transform_indices = @transform_0, window_bounds = array<i64: 16, 256>}, {transform_indices = @transform_1, window_bounds = array<i64: 16, 256>}, {pipeline_mode = #tpu.pipeline_mode<synchronous>, transform_indices = @transform_2, window_bounds = array<i64: 256, 256>}, {pipeline_mode = #tpu.pipeline_mode<synchronous>, transform_indices = @transform_3, window_bounds = array<i64: 1, 256>}, {pipeline_mode = #tpu.pipeline_mode<synchronous>, transform_indices = @transform_4, window_bounds = array<i64: 1, 256>}, {pipeline_mode = #tpu.pipeline_mode<synchronous>, transform_indices = @transform_5, window_bounds = array<i64: 1, 256>}, {transform_indices = @transform_6, window_bounds = array<i64: 16, 256>}]} {
    %c0 = arith.constant 0 : index
    %c0_0 = arith.constant 0 : index
    %0 = vector.load %arg1[%c0, %c0_0] : memref<16x256xf32, #tpu.memory_space<vmem>>, vector<16x256xf32>
    %1 = arith.truncf %0 : vector<16x256xf32> to vector<16x256xbf16>
    %c0_1 = arith.constant 0 : index
    %c0_2 = arith.constant 0 : index
    %2 = vector.load %arg3[%c0_1, %c0_2] : memref<256x256xbf16, #tpu.memory_space<vmem>>, vector<256x256xbf16>
    %cst = arith.constant dense<0.000000e+00> : vector<16x256xf32>
    %3 = tpu.matmul %1, %2, %cst {dimension_numbers = #tpu.dot_dimension_numbers<[1], [0], [0], [1], [0, 0, 1, 1], [], []>} : vector<16x256xbf16>, vector<256x256xbf16>, vector<16x256xf32> -> vector<16x256xf32>
    %c0_3 = arith.constant 0 : index
    %c0_4 = arith.constant 0 : index
    %4 = vector.load %arg4[%c0_3, %c0_4] : memref<1x256xf32, #tpu.memory_space<vmem>>, vector<1x256xf32>
    %5 = vector.broadcast %4 : vector<1x256xf32> to vector<16x256xf32>
    %6 = arith.addf %3, %5 : vector<16x256xf32>
    %c0_5 = arith.constant 0 : index
    %c0_6 = arith.constant 0 : index
    %7 = vector.load %arg2[%c0_5, %c0_6] : memref<16x256xf32, #tpu.memory_space<vmem>>, vector<16x256xf32>
    %8 = arith.addf %6, %7 : vector<16x256xf32>
    %cst_7 = arith.constant dense<0.000000e+00> : vector<16xf32>
    %9 = vector.multi_reduction <add>, %8, %cst_7 [1] : vector<16x256xf32> to vector<16xf32>
    %10 = vector.shape_cast %9 : vector<16xf32> to vector<16x1xf32>
    %cst_8 = arith.constant 3.906250e-03 : f32
    %11 = vector.broadcast %cst_8 : f32 to vector<16x1xf32>
    %12 = arith.mulf %10, %11 : vector<16x1xf32>
    %13 = vector.broadcast %12 : vector<16x1xf32> to vector<16x256xf32>
    %14 = arith.subf %8, %13 : vector<16x256xf32>
    %15 = arith.mulf %14, %14 : vector<16x256xf32>
    %cst_9 = arith.constant dense<0.000000e+00> : vector<16xf32>
    %16 = vector.multi_reduction <add>, %15, %cst_9 [1] : vector<16x256xf32> to vector<16xf32>
    %17 = vector.shape_cast %16 : vector<16xf32> to vector<16x1xf32>
    %cst_10 = arith.constant 3.906250e-03 : f32
    %18 = vector.broadcast %cst_10 : f32 to vector<16x1xf32>
    %19 = arith.mulf %17, %18 : vector<16x1xf32>
    %cst_11 = arith.constant 9.99999996E-13 : f32
    %20 = vector.broadcast %cst_11 : f32 to vector<16x1xf32>
    %21 = arith.addf %19, %20 : vector<16x1xf32>
    %22 = math.rsqrt %21 : vector<16x1xf32>
    %23 = vector.broadcast %22 : vector<16x1xf32> to vector<16x256xf32>
    %24 = arith.mulf %14, %23 : vector<16x256xf32>
    %c0_12 = arith.constant 0 : index
    %c0_13 = arith.constant 0 : index
    %25 = vector.load %arg5[%c0_12, %c0_13] : memref<1x256xf32, #tpu.memory_space<vmem>>, vector<1x256xf32>
    %26 = vector.broadcast %25 : vector<1x256xf32> to vector<16x256xf32>
    %27 = arith.mulf %24, %26 : vector<16x256xf32>
    %c0_14 = arith.constant 0 : index
    %c0_15 = arith.constant 0 : index
    %28 = vector.load %arg6[%c0_14, %c0_15] : memref<1x256xf32, #tpu.memory_space<vmem>>, vector<1x256xf32>
    %29 = vector.broadcast %28 : vector<1x256xf32> to vector<16x256xf32>
    %30 = arith.addf %27, %29 : vector<16x256xf32>
    %c0_16 = arith.constant 0 : index
    %c0_17 = arith.constant 0 : index
    %31 = vector.load %arg7[%c0_16, %c0_17] : memref<16x256xf32, #tpu.memory_space<vmem>>, vector<16x256xf32>
    tpu.vector_store %arg7[%c0_16, %c0_17], %30 {strides = array<i32>} : memref<16x256xf32, #tpu.memory_space<vmem>>, vector<16x256xf32>,
    return
  }
  func.func @transform_0(%arg0: i32) -> (i32, i32) {
    %c0_i32 = arith.constant 0 : i32
    %c0_i32_0 = arith.constant 0 : i32
    return %arg0, %c0_i32 : i32, i32
  }
  func.func @transform_1(%arg0: i32) -> (i32, i32) {
    %c0_i32 = arith.constant 0 : i32
    %c0_i32_0 = arith.constant 0 : i32
    return %arg0, %c0_i32 : i32, i32
  }
  func.func @transform_2(%arg0: i32) -> (i32, i32) {
    %c0_i32 = arith.constant 0 : i32
    %c0_i32_0 = arith.constant 0 : i32
    %c0_i32_1 = arith.constant 0 : i32
    return %c0_i32, %c0_i32_0 : i32, i32
  }
  func.func @transform_3(%arg0: i32) -> (i32, i32) {
    %c0_i32 = arith.constant 0 : i32
    %c0_i32_0 = arith.constant 0 : i32
    %c0_i32_1 = arith.constant 0 : i32
    return %c0_i32, %c0_i32_0 : i32, i32
  }
  func.func @transform_4(%arg0: i32) -> (i32, i32) {
    %c0_i32 = arith.constant 0 : i32
    %c0_i32_0 = arith.constant 0 : i32
    %c0_i32_1 = arith.constant 0 : i32
    return %c0_i32, %c0_i32_0 : i32, i32
  }
  func.func @transform_5(%arg0: i32) -> (i32, i32) {
    %c0_i32 = arith.constant 0 : i32
    %c0_i32_0 = arith.constant 0 : i32
    %c0_i32_1 = arith.constant 0 : i32
    return %c0_i32, %c0_i32_0 : i32, i32
  }
  func.func @transform_6(%arg0: i32) -> (i32, i32) {
    %c0_i32 = arith.constant 0 : i32
    %c0_i32_0 = arith.constant 0 : i32
    return %arg0, %c0_i32 : i32, i32
  }
}

</mosaic_0001>

<bundles_post_ra>
// kernel: tpu_custom_call.1
= control target key start
LH: loop header
LB: loop body
LE: loop exit
PB: predicated region body
PF: predicated region fallthrough
CT: control target
= control target key end

     0   :  { %11 = vsyncpa [#allocation3], 0  ;;  %s663_s0 = inlined_call_operand.hbm [shape: f32[16,256], index: 0, kind: input, shape index: {}]   ;;  %s664_s1 = inlined_call_operand.hbm [shape: f32[16,256], index: 1, kind: input, shape index: {}]   ;;  %s665_s2 = inlined_call_operand.hbm [shape: bf16[256,256], index: 2, kind: input, shape index: {}]   ;;  %s666_s3 = inlined_call_operand.vmem [shape: f32[1,256], index: 3, kind: input, shape index: {}]   ;;  %s667_s4 = inlined_call_operand.vmem [shape: f32[1,256], index: 4, kind: input, shape index: {}]   ;;  %s668_s5 = inlined_call_operand.vmem [shape: f32[1,256], index: 5, kind: input, shape index: {}]   ;;  %s669_s6 = inlined_call_operand.hbm [shape: f32[16,256], index: 6, kind: output, shape index: {}]  }
   0x1   :  { %12 = vsyncpa [#allocation6], 0 }
   0x2   :  { %13 = vsyncpa [#allocation4], 0  ;;  %s590_s21 = smov [#allocation5]   ;;  %s591_s23 = smov [#allocation2]  }
   0x3   :  { %s31_s22 = sshll.u32 %s590_s21, 4  ;;  %s19_s24 = sshll.u32 %s591_s23, 4  ;;  %s32_s22 = int_to_ptr.vmem [resolvable:$true] %s31_s22  ;;  %s20_s24 = int_to_ptr.vmem [resolvable:$true] %s19_s24 }
   0x4   :  { %s512_s25 = scalar_lea.vmem %s32_s22, 512  ;;  %p517_p1 = scmp.lt.s32.totalorder %s32_s22, %s32_s22 }
   0x5   :  { %p513_p0 = scmp.ne.s32.totalorder %s32_s22, %s512_s25  ;;  %p518_p2 = scmp.lt.s32.totalorder %s512_s25, %s512_s25 }
   0x7   :  { %p519_p3 = por %p518_p2, %p517_p1 }
   0x9   :  { %p520_p4 = pnand %p519_p3, %p513_p0 }
   0xb   :  { %523 = shalt.err (!%p520_p4)
}
   0xc   :  { %s592_s26 = smov 256   ;;  %s593_s27 = smov 16  }
   0xd   :  { %37 = dma.hbm_to_vmem [thread:$0]  %s664_s1, 512, %s32_s22, [#allocation6], %s592_s26, %s592_s26, %s593_s27  }
   0xe   :  { %s532_s30 = scalar_lea.vmem %s20_s24, 512  ;;  %p537_p6 = scmp.lt.s32.totalorder %s20_s24, %s20_s24 }
   0xf   :  { %p533_p5 = scmp.ne.s32.totalorder %s20_s24, %s532_s30  ;;  %p538_p7 = scmp.lt.s32.totalorder %s532_s30, %s532_s30 }
  0x11   :  { %p539_p8 = por %p538_p7, %p537_p6 }
  0x13   :  { %p540_p9 = pnand %p539_p8, %p533_p5 }
  0x15   :  { %543 = shalt.err (!%p540_p9)
}
  0x16   :  { %25 = dma.hbm_to_vmem [thread:$0]  %s663_s0, 512, %s20_s24, [#allocation3], %s592_s26, %s592_s26, %s593_s27  }
  0x17   :  { %s594_s9 = smov [#allocation7]  }
  0x18   :  { %s43_s10 = sshll.u32 %s594_s9, 4  ;;  %s44_s10 = int_to_ptr.vmem [resolvable:$true] %s43_s10 }
  0x19   :  { %s552_s11 = scalar_lea.vmem %s44_s10, 4096  ;;  %p557_p11 = scmp.lt.s32.totalorder %s44_s10, %s44_s10 }
  0x1a   :  { %p553_p10 = scmp.ne.s32.totalorder %s44_s10, %s552_s11  ;;  %p558_p12 = scmp.lt.s32.totalorder %s552_s11, %s552_s11 }
  0x1c   :  { %p559_p13 = por %p558_p12, %p557_p11 }
  0x1e   :  { %p560_p0 = pnand %p559_p13, %p553_p10 }
  0x20   :  { %563 = shalt.err (!%p560_p0)
}
  0x21   :  { %s595_s1 = smov 128   ;;  %s596_s12 = smov 8  }
  0x22   :  { %49 = dma.hbm_to_vmem [thread:$0]  %s665_s2, 4096, %s44_s10, [#allocation6], %s595_s1, %s595_s1, %s596_s12  }
  0x23   :  { %584 = dma.done.wait [#allocation3], 512  }
  0x24   :  { %585 = vsyncadd [#allocation3], 4294966784 }
  0x25   :  { %586 = dma.done.wait [#allocation6], 4608  }
  0x26   :  { %587 = vsyncadd [#allocation6], 4294962688  ;;  %v452_v0 = vld [vmem:[#allocation7 + $0x74] ss:$8 sps:$4 sm:$0xff]   ;;  %v454_v1 = vld [vmem:[#allocation7 + $0x70] ss:$8 sps:$4 sm:$0xff]   ;;  %v105_v38 = vlaneseq }
  0x27   :  { %275 = vmatprep.subr.bf16.mxu0 %v452_v0  ;;  %v455_v2 = vld [vmem:[#allocation7 + $0x64] ss:$8 sps:$4 sm:$0xff]   ;;  %v457_v3 = vld [vmem:[#allocation7 + $0x60] ss:$8 sps:$4 sm:$0xff]   ;;  %v458_v4 = vld [vmem:[#allocation7 + $0x54] ss:$8 sps:$4 sm:$0xff]  }
  0x28   :  { %276 = vmatpush1.bf16.msra.mxu0 %v454_v1  ;;  %v460_v5 = vld [vmem:[#allocation7 + $0x50] ss:$8 sps:$4 sm:$0xff]   ;;  %v461_v6 = vld [vmem:[#allocation7 + $0x44] ss:$8 sps:$4 sm:$0xff]   ;;  %v463_v7 = vld [vmem:[#allocation7 + $0x40] ss:$8 sps:$4 sm:$0xff]  }
  0x29   :  { %277 = vmatprep.subr.bf16.mxu0 %v455_v2  ;;  %v464_v8 = vld [vmem:[#allocation7 + $0x34] ss:$8 sps:$4 sm:$0xff]   ;;  %v466_v9 = vld [vmem:[#allocation7 + $0x30] ss:$8 sps:$4 sm:$0xff]   ;;  %v467_v10 = vld [vmem:[#allocation7 + $0x24] ss:$8 sps:$4 sm:$0xff]  }
  0x2a   :  { %v469_v11 = vld [vmem:[#allocation7 + $0x20] ss:$8 sps:$4 sm:$0xff]   ;;  %v470_v12 = vld [vmem:[#allocation7 + $0x14] ss:$8 sps:$4 sm:$0xff]   ;;  %v472_v16 = vld [vmem:[#allocation7 + $0x10] ss:$8 sps:$4 sm:$0xff]  }
  0x2b   :  { %v66_v13 = vld [vmem:[#allocation2 + $0x8] sm:$0xff]  ;;  %v68_v14 = vld [vmem:[#allocation2 + $0x18] sm:$0xff]  ;;  %v65_v35 = vld [vmem:[#allocation2] sm:$0xff]  ;;  %v106_v39 = vshrl.u32 %v105_v38, 7  ;;  %s597_s18 = smov [#allocation8]  }
  0x2c   :  { %278 = vmatpush1.bf16.msra.mxu0 %v457_v3  ;;  %v70_v15 = vpack.c.bf16 %v68_v14, %v66_v13  ;;  %v473_v17 = vld [vmem:[#allocation7 + $0x4] ss:$8 sps:$4 sm:$0xff]   ;;  %v475_v18 = vld [vmem:[#allocation7] ss:$8 sps:$4 sm:$0xff]   ;;  %v476_v19 = vld [vmem:[#allocation7 + $0xf4] ss:$8 sps:$4 sm:$0xff]  }
  0x2d   :  { %279 = vmatprep.subr.bf16.mxu0 %v458_v4  ;;  %v478_v20 = vld [vmem:[#allocation7 + $0xf0] ss:$8 sps:$4 sm:$0xff]   ;;  %v479_v21 = vld [vmem:[#allocation7 + $0xe4] ss:$8 sps:$4 sm:$0xff]   ;;  %v481_v22 = vld [vmem:[#allocation7 + $0xe0] ss:$8 sps:$4 sm:$0xff]  }
  0x2e   :  { %307 = vmatprep.mubr.bf16.mxu0 %v70_v15  ;;  %v482_v23 = vld [vmem:[#allocation7 + $0xd4] ss:$8 sps:$4 sm:$0xff]   ;;  %v484_v24 = vld [vmem:[#allocation7 + $0xd0] ss:$8 sps:$4 sm:$0xff]   ;;  %v485_v25 = vld [vmem:[#allocation7 + $0xc4] ss:$8 sps:$4 sm:$0xff]  }
  0x2f   :  { %v487_v26 = vld [vmem:[#allocation7 + $0xc0] ss:$8 sps:$4 sm:$0xff]   ;;  %v488_v27 = vld [vmem:[#allocation7 + $0xb4] ss:$8 sps:$4 sm:$0xff]   ;;  %v490_v28 = vld [vmem:[#allocation7 + $0xb0] ss:$8 sps:$4 sm:$0xff]  }
  0x30   :  { %280 = vmatpush1.bf16.msra.mxu0 %v460_v5  ;;  %v491_v29 = vld [vmem:[#allocation7 + $0xa4] ss:$8 sps:$4 sm:$0xff]   ;;  %v493_v30 = vld [vmem:[#allocation7 + $0xa0] ss:$8 sps:$4 sm:$0xff]   ;;  %v494_v31 = vld [vmem:[#allocation7 + $0x94] ss:$8 sps:$4 sm:$0xff]  }
  0x31   :  { %281 = vmatprep.subr.bf16.mxu0 %v461_v6  ;;  %v496_v32 = vld [vmem:[#allocation7 + $0x90] ss:$8 sps:$4 sm:$0xff]   ;;  %v497_v33 = vld [vmem:[#allocation7 + $0x84] ss:$8 sps:$4 sm:$0xff]   ;;  %v499_v34 = vld [vmem:[#allocation7 + $0x80] ss:$8 sps:$4 sm:$0xff]  }
  0x32   :  { %v67_v36 = vld [vmem:[#allocation2 + $0x10] sm:$0xff]  ;;  %v107_v40 = vsub.s32 0, %v106_v39  ;;  %v103_v41 = vld [vmem:[%s666_s3] sm:$0x3]  ;;  %v111_v42 = vsub.s32 1, %v106_v39  ;;  %v319_v49 = vld [vmem:[#allocation5 + $0x8] sm:$0xff] }
  0x33   :  { %v69_v37 = vpack.c.bf16 %v67_v36, %v65_v35  ;;  %v318_v48 = vld [vmem:[#allocation5] sm:$0xff]  ;;  %v320_v55 = vld [vmem:[#allocation5 + $0x10] sm:$0xff]  ;;  %v321_v57 = vld [vmem:[#allocation5 + $0x18] sm:$0xff] }
  0x34   :  { %282 = vmatpush1.bf16.msra.mxu0 %v463_v7  ;;  %v108_v43 = vrot.slane %v103_v41, %v107_v40  ;;  %v112_v44 = vrot.slane %v103_v41, %v111_v42 }
  0x35   :  { %283 = vmatprep.subr.bf16.mxu0 %v464_v8 }
  0x38   :  { %284 = vmatpush1.bf16.msra.mxu0 %v466_v9 }
  0x39   :  { %285 = vmatprep.subr.bf16.mxu0 %v467_v10 }
  0x3c   :  { %286 = vmatpush1.bf16.msra.mxu0 %v469_v11 }
  0x3d   :  { %287 = vmatprep.subr.bf16.mxu0 %v470_v12 }
  0x40   :  { %288 = vmatpush1.bf16.msra.mxu0 %v472_v16 }
  0x41   :  { %289 = vmatprep.subr.bf16.mxu0 %v473_v17 }
  0x44   :  { %290 = vmatpush1.bf16.msra.mxu0 %v475_v18 }
  0x45   :  { %291 = vmatprep.subr.bf16.mxu0 %v476_v19  ;;  %v358_v19 = vld [vmem:[%s667_s4] sm:$0x3]  ;;  %s399_s4 = sshll.u32 %s597_s18, 4  ;;  %s400_s4 = int_to_ptr.vmem [resolvable:$true] %s399_s4 }
  0x46   :  { %p569_p2 = scmp.lt.s32.totalorder %s400_s4, %s400_s4 }
  0x48   :  { %292 = vmatpush2.bf16.msra.mxu0 %v478_v20  ;;  %v374_v20 = vld [vmem:[%s668_s5] sm:$0x3]  ;;  %s564_s5 = scalar_lea.vmem %s400_s4, 512 }
  0x49   :  { %293 = vmatprep.subr.bf16.mxu0 %v479_v21  ;;  %v363_v21 = vrot.slane %v358_v19, %v107_v40  ;;  %p565_p1 = scmp.ne.s32.totalorder %s400_s4, %s564_s5  ;;  %p570_p3 = scmp.lt.s32.totalorder %s564_s5, %s564_s5 }
  0x4b   :  { %p571_p4 = por %p570_p3, %p569_p2 }
  0x4c   :  { %294 = vmatpush2.bf16.msra.mxu0 %v481_v22  ;;  %v367_v22 = vrot.slane %v358_v19, %v111_v42 }
  0x4d   :  { %295 = vmatprep.subr.bf16.mxu0 %v482_v23  ;;  %p572_p5 = pnand %p571_p4, %p565_p1 }
  0x50   :  { %296 = vmatpush2.bf16.msra.mxu0 %v484_v24  ;;  %v379_v24 = vrot.slane %v374_v20, %v107_v40 }
  0x51   :  { %297 = vmatprep.subr.bf16.mxu0 %v485_v25  ;;  %v383_v25 = vrot.slane %v374_v20, %v111_v42 }
  0x54   :  { %298 = vmatpush2.bf16.msra.mxu0 %v487_v26 }
  0x55   :  { %299 = vmatprep.subr.bf16.mxu0 %v488_v27 }
  0x58   :  { %300 = vmatpush2.bf16.msra.mxu0 %v490_v28 }
  0x59   :  { %301 = vmatprep.subr.bf16.mxu0 %v491_v29 }
  0x5c   :  { %302 = vmatpush2.bf16.msra.mxu0 %v493_v30 }
  0x5d   :  { %303 = vmatprep.subr.bf16.mxu0 %v494_v31 }
  0x60   :  { %304 = vmatpush2.bf16.msra.mxu0 %v496_v32 }
  0x61   :  { %305 = vmatprep.subr.bf16.mxu0 %v497_v33 }
  0x64   :  { %306 = vmatpush2.bf16.msra.mxu0 %v499_v34 }
  0x67   :  { %308 = vmatmul.mubr.bf16.vlgmr.msra.gmra.mxu0 %v69_v37 }
 0x127   :  { %v309_v45 = vpop.f32.mrf.mxu0 }
 0x128   :  { %v310_v46 = vadd.f32 %v309_v45, %v108_v43 }
 0x129   :  { %v311_v47 = vpop.f32.mrf.mxu0 }
 0x12a   :  { %v312_v50 = vadd.f32 %v311_v47, %v112_v44  ;;  %v322_v53 = vadd.f32 %v318_v48, %v310_v46 }
 0x12b   :  { %v313_v51 = vpop.f32.mrf.mxu0 }
 0x12c   :  { %v314_v52 = vadd.f32 %v313_v51, %v108_v43  ;;  %v323_v54 = vadd.f32 %v319_v49, %v312_v50 }
 0x12d   :  { %v315_v56 = vpop.f32.mrf.mxu0 }
 0x12e   :  { %v316_v58 = vadd.f32 %v315_v56, %v112_v44  ;;  %v326_v59 = vadd.f32 %v323_v54, %v322_v53  ;;  %v324_v60 = vadd.f32 %v320_v55, %v314_v52 }
 0x130   :  { %v325_v61 = vadd.f32 %v321_v57, %v316_v58  ;;  %327 = vadd.xlane.f32.xlu0 %v326_v59 }
 0x132   :  { %v329_v62 = vadd.f32 %v325_v61, %v324_v60 }
 0x134   :  { %330 = vadd.xlane.f32.xlu0 %v329_v62 }
 0x1b9   :  { %v328_v63 = vpop.xlane.xlu0 %327 }
 0x1ba   :  { %v332_v0 = vmul.f32 0.00390625, %v328_v63 }
 0x1bc   :  { %v334_v1 = vsub.f32 %v322_v53, %v332_v0  ;;  %v335_v2 = vsub.f32 %v323_v54, %v332_v0 }
 0x1bd   :  { %v331_v3 = vpop.xlane.xlu0 %330 }
 0x1be   :  { %v333_v4 = vmul.f32 0.00390625, %v331_v3  ;;  %v338_v5 = vmul.f32 %v334_v1, %v334_v1  ;;  %v339_v6 = vmul.f32 %v335_v2, %v335_v2 }
 0x1c0   :  { %v336_v7 = vsub.f32 %v324_v60, %v333_v4  ;;  %v337_v8 = vsub.f32 %v325_v61, %v333_v4  ;;  %v342_v9 = vadd.f32 %v339_v6, %v338_v5 }
 0x1c2   :  { %343 = vadd.xlane.f32.xlu1 %v342_v9  ;;  %v340_v10 = vmul.f32 %v336_v7, %v336_v7  ;;  %v341_v11 = vmul.f32 %v337_v8, %v337_v8 }
 0x1c4   :  { %v345_v12 = vadd.f32 %v341_v11, %v340_v10 }
 0x1c6   :  { %346 = vadd.xlane.f32.xlu1 %v345_v12 }
 0x24b   :  { %v344_v13 = vpop.xlane.xlu1 %343 }
 0x24c   :  { %v348_v14 = vmul.f32 0.00390625, %v344_v13 }
 0x24e   :  { %v350_v15 = vadd.f32 1e-12, %v348_v14 }
 0x24f   :  { %v347_v16 = vpop.xlane.xlu1 %346 }
 0x250   :  { %500 = vrsqrt.f32 %v350_v15  ;;  %v349_v17 = vmul.f32 0.00390625, %v347_v16 }
 0x252   :  { %v351_v18 = vadd.f32 1e-12, %v349_v17 }
 0x254   :  { %502 = vrsqrt.f32 %v351_v18 }
 0x25d   :  { %v501_v23 = vpop.eup %500 }
 0x25e   :  { %v354_v26 = vmul.f32 %v501_v23, %v334_v1  ;;  %v355_v27 = vmul.f32 %v501_v23, %v335_v2 }
 0x260   :  { %v370_v28 = vmul.f32 %v363_v21, %v354_v26  ;;  %v371_v29 = vmul.f32 %v367_v22, %v355_v27 }
 0x261   :  { %v503_v30 = vpop.eup %502 }
 0x262   :  { %v356_v31 = vmul.f32 %v503_v30, %v336_v7  ;;  %v357_v32 = vmul.f32 %v503_v30, %v337_v8  ;;  %v386_v33 = vadd.f32 %v379_v24, %v370_v28  ;;  %v387_v34 = vadd.f32 %v383_v25, %v371_v29 }
 0x264   :  { %v372_v35 = vmul.f32 %v363_v21, %v356_v31  ;;  %v373_v36 = vmul.f32 %v367_v22, %v357_v32  ;;  %390 = vst [vmem:[#allocation8] sm:$0xff] %v386_v33  ;;  %391 = vst [vmem:[#allocation8 + $0x8] sm:$0xff] %v387_v34 }
 0x266   :  { %v388_v37 = vadd.f32 %v379_v24, %v372_v35  ;;  %v389_v38 = vadd.f32 %v383_v25, %v373_v36 }
 0x268   :  { %392 = vst [vmem:[#allocation8 + $0x10] sm:$0xff] %v388_v37  ;;  %393 = vst [vmem:[#allocation8 + $0x18] sm:$0xff] %v389_v38 }
 0x269   :  { %575 = shalt.err (!%p572_p5)
}
 0x26a   :  { %405 = dma.vmem_to_hbm [thread:$0]  %s400_s4, 512, %s669_s6, [#allocation4], %s592_s26, %s592_s26, %s593_s27  }
 0x26b   :  { %588 = dma.done.wait [#allocation4], 512  }
 0x26c   :  { %589 = vsyncadd [#allocation4], 4294966784 }
 0x26d   :  { %409 = vsyncpa [#allocation3], 1 }
 0x26e   :  { %410 = vsyncpa [#allocation6], 1 }
 0x26f   :  { %411 = vsyncpa [#allocation4], 1 }

</bundles_post_ra>
